<compile_context>
chip_gen: v7x
topology: tpu7x:2x2x1
jax: 0.10.0
libtpu: 0.0.40
codegen_flags: <defaults>
</compile_context>

<pallas_src>
import jax
import jax.numpy as jnp
import numpy as np
from jax.experimental import pallas as pl
from jax.experimental.pallas import tpu as pltpu


# ---------------------------------------------------------------------------
# Fused kernel: process_graph + 2 GCN layers + collapsed fc head
# (everything in transposed [channels, nodes] layout -> lane-dense, flatten free)
# ---------------------------------------------------------------------------
def _gcn_fused_kernel(at_ref, xt_ref, w1t_ref, b1_ref, w2t_ref, b2_ref,
                      weff_ref, beff_ref, o_ref):
    Bb, N = at_ref.shape[0], at_ref.shape[1]
    xcat = xt_ref[0]                                       # [in_c, Bb*N]  f32

    # Layer-1 feature transform for all Bb batch elements at once (their X^T
    # tiles are lane-concatenated in the wrapper): fills Bb*N MXU lanes.
    p1 = jnp.dot(w1t_ref[...], xcat,
                 preferred_element_type=jnp.float32) + b1_ref[...]   # [hid_c, Bb*N]

    for b in range(Bb):                                    # static, unrolled
        at_b = at_ref[b]                                   # [N, N] bf16 (A^T, 0/1)

        # process_graph without eye()/A_hat materialization:
        #   deg = rowsum(A + I) = colsum(A^T) + 1   (always >= 1, no zero guard)
        deg = jnp.sum(at_b.astype(jnp.float32), axis=0, keepdims=True) + 1.0
        d_inv = pl.reciprocal(deg)                         # exact; [1, N]

        # --- GCN layer 1:  D^-1 (A+I) P  ==  d_inv * (P^T @ A^T + P^T)  (transposed)
        p1_b = p1[:, b * N:(b + 1) * N]                    # [hid_c, N]
        # bf16 operands for the NxN adjacency matmul (f32 accumulation) —
        # intentional precision trade, ~3 decimal digits vs f32.
        h1_b = jnp.dot(p1_b.astype(jnp.bfloat16), at_b,
                       preferred_element_type=jnp.float32) + p1_b
        h1_b = jnp.maximum(h1_b * d_inv, 0.0)              # [hid_c, N]

        # --- GCN layer 2
        p2_b = jnp.dot(w2t_ref[...], h1_b,
                       preferred_element_type=jnp.float32) + b2_ref[...]
        h2_b = jnp.dot(p2_b.astype(jnp.bfloat16), at_b,
                       preferred_element_type=jnp.float32) + p2_b
        h2_b = jnp.maximum(h2_b * d_inv, 0.0)              # [out_c, N] == h2^T

        # --- collapsed (activation-free) fc head:
        #   flat[n*out_c + c] == h2t[c, n]  =>  flat @ Weff == <h2t, Weff_regrouped>
        z = jnp.sum(h2_b * weff_ref[...], keepdims=True) + beff_ref[...]   # [1, 1]
        o_ref[b] = z


# ---------------------------------------------------------------------------
# Wrapper
# ---------------------------------------------------------------------------
def gcn_forward(graph, x, params, *, batch_block=1):
    w1, b1, w2, b2, wf1, bf1, wf2, bf2, wf3, bf3 = params
    B, N, in_c = x.shape
    hid_c = w1.shape[1]
    out_c = w2.shape[1]
    Bb = batch_block
    assert B % Bb == 0, "batch_block must divide B"
    G = B // Bb

    f32, bf16 = jnp.float32, jnp.bfloat16

    # Layout prep (cheap one-time XLA ops; in a real model the weight parts
    # fold into parameter preprocessing).
    # A^T per batch element in bf16 (A is 0/1 -> lossless); halves the A DMA.
    at = jnp.swapaxes(graph, 1, 2).astype(bf16)                       # [B, N, N]
    # X^T, with Bb batch elements concatenated along the lane axis.
    xt = jnp.swapaxes(x, 1, 2).astype(f32)                            # [B, in_c, N]
    xt_g = (xt.reshape(G, Bb, in_c, N)
              .transpose(0, 2, 1, 3)
              .reshape(G, in_c, Bb * N))                              # [G, in_c, Bb*N]

    w1t = w1.T.astype(f32)                                            # [hid_c, in_c]
    w2t = w2.T.astype(f32)                                            # [out_c, hid_c]
    b1c = b1.reshape(hid_c, 1).astype(f32)
    b2c = b2.reshape(out_c, 1).astype(f32)

    # Collapse the activation-free fc head:  y = flat @ Weff + beff
    weff = wf1 @ wf2 @ wf3                                            # [N*out_c, 1]
    beff = (bf1 @ wf2 @ wf3 + bf2 @ wf3 + bf3).reshape(1, 1)          # [1, 1]
    # flat[n*out_c + c] = h2t[c, n]  ->  weff_r[c, n] = weff[n*out_c + c]
    weff_r = weff.reshape(N, out_c).T.astype(f32)                     # [out_c, N]

    out = pl.pallas_call(
        _gcn_fused_kernel,
        out_shape=jax.ShapeDtypeStruct((B, 1, 1), f32),
        grid=(G,),
        in_specs=[
            pl.BlockSpec((Bb, N, N), lambda g: (g, 0, 0)),            # A^T (bf16)
            pl.BlockSpec((1, in_c, Bb * N), lambda g: (g, 0, 0)),     # X^T lane-concat
            pl.BlockSpec((hid_c, in_c), lambda g: (0, 0)),            # W1^T
            pl.BlockSpec((hid_c, 1), lambda g: (0, 0)),               # b1
            pl.BlockSpec((out_c, hid_c), lambda g: (0, 0)),           # W2^T
            pl.BlockSpec((out_c, 1), lambda g: (0, 0)),               # b2
            pl.BlockSpec((out_c, N), lambda g: (0, 0)),               # Weff regrouped
            pl.BlockSpec((1, 1), lambda g: (0, 0)),                   # beff
        ],
        out_specs=pl.BlockSpec((Bb, 1, 1), lambda g: (g, 0, 0)),
        compiler_params=pltpu.CompilerParams(
            dimension_semantics=("parallel",),
            vmem_limit_bytes=16 * 1024 * 1024,
        ),
    )(at, xt_g, w1t, b1c, w2t, b2c, weff_r, beff)

    # matches output_2.squeeze() on a (B, 1) tensor
    return jnp.squeeze(out)


# ---------------------------------------------------------------------------
# Pure-JAX f32 reference (mirrors the torch forward, for correctness check)
# ---------------------------------------------------------------------------
def gcn_reference(graph, x, params):
    w1, b1, w2, b2, wf1, bf1, wf2, bf2, wf3, bf3 = params
    B, N, _ = x.shape
    a = graph + jnp.eye(N, dtype=graph.dtype)[None]
    deg = jnp.sum(a, axis=2, keepdims=True)
    d_inv = jnp.where(deg == 0.0, 0.0, 1.0 / deg)
    a_hat = d_inv * a
    h = jnp.maximum(jnp.einsum("bnm,bmh->bnh", a_hat, x @ w1 + b1), 0.0)
    h2 = jnp.maximum(jnp.einsum("bnm,bmh->bnh", a_hat, h @ w2 + b2), 0.0)
    flat = h2.reshape(B, -1)
    z = ((flat @ wf1 + bf1) @ wf2 + bf2) @ wf3 + bf3
    return jnp.squeeze(z)


if __name__ == "__main__":
    B, N, in_c, hid_c, out_c = 2, 128, 16, 32, 8

    key = jax.random.PRNGKey(0)
    k = jax.random.split(key, 14)

    # synthetic inputs (the torch module's `data` dict entries)
    graph = (jax.random.uniform(k[0], (B, N, N)) < 0.1).astype(jnp.float32)
    vertices_feature_x = jax.random.uniform(
        k[1], (B, N, in_c), minval=-1.0, maxval=1.0, dtype=jnp.float32
    )

    # deterministic parameter init (same shapes/scales as torch nn.Linear,
    # weights stored [in, out] so y = x @ W + b)
    def linear_init(kw, kb, fan_in, fan_out):
        lim = 1.0 / np.sqrt(fan_in)
        w = jax.random.uniform(kw, (fan_in, fan_out), minval=-lim, maxval=lim,
                               dtype=jnp.float32)
        b = jax.random.uniform(kb, (fan_out,), minval=-lim, maxval=lim,
                               dtype=jnp.float32)
        return w, b

    w1, b1 = linear_init(k[2], k[3], in_c, hid_c)          # linear_1
    w2, b2 = linear_init(k[4], k[5], hid_c, out_c)         # linear_2
    wf1, bf1 = linear_init(k[6], k[7], N * out_c, 1024)    # fc[0]
    wf2, bf2 = linear_init(k[8], k[9], 1024, 512)          # fc[1]
    wf3, bf3 = linear_init(k[10], k[11], 512, 1)           # fc[2]
    params = (w1, b1, w2, b2, wf1, bf1, wf2, bf2, wf3, bf3)

    ref = gcn_reference(graph, vertices_feature_x, params)

    # Exercise both the per-batch grid (v7x TC split) and the batch-blocked
    # (wide-lane) path.
    for bb in (1, 2):
        out = gcn_forward(graph, vertices_feature_x, params, batch_block=bb)
        out = jax.block_until_ready(out)
        np.testing.assert_allclose(np.asarray(out), np.asarray(ref),
                                   rtol=2e-2, atol=2e-2)

    print("KERNEL_OK")
</pallas_src>

<mosaic_0001>
module attributes {stable_mosaic.version = 11 : i64} {
  func.func @_gcn_fused_kernel(%arg0: i32, %arg1: memref<1x128x128xbf16, #tpu.memory_space<vmem>>, %arg2: memref<1x16x128xf32, #tpu.memory_space<vmem>>, %arg3: memref<32x16xf32, #tpu.memory_space<vmem>>, %arg4: memref<32x1xf32, #tpu.memory_space<vmem>>, %arg5: memref<8x32xf32, #tpu.memory_space<vmem>>, %arg6: memref<8x1xf32, #tpu.memory_space<vmem>>, %arg7: memref<8x128xf32, #tpu.memory_space<vmem>>, %arg8: memref<1x1xf32, #tpu.memory_space<vmem>>, %arg9: memref<1x1x1xf32, #tpu.memory_space<vmem>>) attributes {dimension_semantics = [#tpu.dimension_semantics<parallel>], iteration_bounds = array<i64: 2>, scalar_prefetch = 0 : i64, scratch_operands = 0 : i64, tpu.core_type = #tpu.core_type<tc>, window_params = [{transform_indices = @transform_0, window_bounds = array<i64: 1, 128, 128>}, {transform_indices = @transform_1, window_bounds = array<i64: 1, 16, 128>}, {pipeline_mode = #tpu.pipeline_mode<synchronous>, transform_indices = @transform_2, window_bounds = array<i64: 32, 16>}, {pipeline_mode = #tpu.pipeline_mode<synchronous>, transform_indices = @transform_3, window_bounds = array<i64: 32, 1>}, {pipeline_mode = #tpu.pipeline_mode<synchronous>, transform_indices = @transform_4, window_bounds = array<i64: 8, 32>}, {pipeline_mode = #tpu.pipeline_mode<synchronous>, transform_indices = @transform_5, window_bounds = array<i64: 8, 1>}, {pipeline_mode = #tpu.pipeline_mode<synchronous>, transform_indices = @transform_6, window_bounds = array<i64: 8, 128>}, {pipeline_mode = #tpu.pipeline_mode<synchronous>, transform_indices = @transform_7, window_bounds = array<i64: 1, 1>}, {transform_indices = @transform_8, window_bounds = array<i64: 1, 1, 1>}]} {
    %c0 = arith.constant 0 : index
    %c0_0 = arith.constant 0 : index
    %c0_1 = arith.constant 0 : index
    %0 = vector.load %arg2[%c0, %c0_0, %c0_1] : memref<1x16x128xf32, #tpu.memory_space<vmem>>, vector<1x16x128xf32>
    %1 = vector.shape_cast %0 : vector<1x16x128xf32> to vector<16x128xf32>
    %c0_2 = arith.constant 0 : index
    %c0_3 = arith.constant 0 : index
    %2 = vector.load %arg3[%c0_2, %c0_3] : memref<32x16xf32, #tpu.memory_space<vmem>>, vector<32x16xf32>
    %cst = arith.constant dense<0.000000e+00> : vector<32x128xf32>
    %3 = tpu.matmul %2, %1, %cst {dimension_numbers = #tpu.dot_dimension_numbers<[1], [0], [0], [1], [0, 0, 1, 1], [], []>} : vector<32x16xf32>, vector<16x128xf32>, vector<32x128xf32> -> vector<32x128xf32>
    %c0_4 = arith.constant 0 : index
    %c0_5 = arith.constant 0 : index
    %4 = vector.load %arg4[%c0_4, %c0_5] : memref<32x1xf32, #tpu.memory_space<vmem>>, vector<32x1xf32>
    %5 = vector.broadcast %4 : vector<32x1xf32> to vector<32x128xf32>
    %6 = arith.addf %3, %5 : vector<32x128xf32>
    %c0_6 = arith.constant 0 : index
    %c0_7 = arith.constant 0 : index
    %c0_8 = arith.constant 0 : index
    %7 = vector.load %arg1[%c0_6, %c0_7, %c0_8] : memref<1x128x128xbf16, #tpu.memory_space<vmem>>, vector<1x128x128xbf16>
    %8 = vector.shape_cast %7 : vector<1x128x128xbf16> to vector<128x128xbf16>
    %9 = arith.extf %8 : vector<128x128xbf16> to vector<128x128xf32>
    %cst_9 = arith.constant dense<0.000000e+00> : vector<128xf32>
    %10 = vector.multi_reduction <add>, %9, %cst_9 [0] : vector<128x128xf32> to vector<128xf32>
    %11 = vector.shape_cast %10 : vector<128xf32> to vector<1x128xf32>
    %cst_10 = arith.constant 1.000000e+00 : f32
    %12 = vector.broadcast %cst_10 : f32 to vector<1x128xf32>
    %13 = arith.addf %11, %12 : vector<1x128xf32>
    %14 = tpu.reciprocal %13 : vector<1x128xf32> -> vector<1x128xf32>
    %15 = arith.truncf %6 : vector<32x128xf32> to vector<32x128xbf16>
    %cst_11 = arith.constant dense<0.000000e+00> : vector<32x128xf32>
    %16 = tpu.matmul %15, %8, %cst_11 {dimension_numbers = #tpu.dot_dimension_numbers<[1], [0], [0], [1], [0, 0, 1, 1], [], []>} : vector<32x128xbf16>, vector<128x128xbf16>, vector<32x128xf32> -> vector<32x128xf32>
    %17 = arith.addf %16, %6 : vector<32x128xf32>
    %18 = vector.broadcast %14 : vector<1x128xf32> to vector<32x128xf32>
    %19 = arith.mulf %17, %18 : vector<32x128xf32>
    %cst_12 = arith.constant 0.000000e+00 : f32
    %20 = vector.broadcast %cst_12 : f32 to vector<32x128xf32>
    %21 = arith.maximumf %19, %20 : vector<32x128xf32>
    %c0_13 = arith.constant 0 : index
    %c0_14 = arith.constant 0 : index
    %22 = vector.load %arg5[%c0_13, %c0_14] : memref<8x32xf32, #tpu.memory_space<vmem>>, vector<8x32xf32>
    %cst_15 = arith.constant dense<0.000000e+00> : vector<8x128xf32>
    %23 = tpu.matmul %22, %21, %cst_15 {dimension_numbers = #tpu.dot_dimension_numbers<[1], [0], [0], [1], [0, 0, 1, 1], [], []>} : vector<8x32xf32>, vector<32x128xf32>, vector<8x128xf32> -> vector<8x128xf32>
    %c0_16 = arith.constant 0 : index
    %c0_17 = arith.constant 0 : index
    %24 = vector.load %arg6[%c0_16, %c0_17] : memref<8x1xf32, #tpu.memory_space<vmem>>, vector<8x1xf32>
    %25 = vector.broadcast %24 : vector<8x1xf32> to vector<8x128xf32>
    %26 = arith.addf %23, %25 : vector<8x128xf32>
    %27 = arith.truncf %26 : vector<8x128xf32> to vector<8x128xbf16>
    %cst_18 = arith.constant dense<0.000000e+00> : vector<8x128xf32>
    %28 = tpu.matmul %27, %8, %cst_18 {dimension_numbers = #tpu.dot_dimension_numbers<[1], [0], [0], [1], [0, 0, 1, 1], [], []>} : vector<8x128xbf16>, vector<128x128xbf16>, vector<8x128xf32> -> vector<8x128xf32>
    %29 = arith.addf %28, %26 : vector<8x128xf32>
    %30 = vector.broadcast %14 : vector<1x128xf32> to vector<8x128xf32>
    %31 = arith.mulf %29, %30 : vector<8x128xf32>
    %cst_19 = arith.constant 0.000000e+00 : f32
    %32 = vector.broadcast %cst_19 : f32 to vector<8x128xf32>
    %33 = arith.maximumf %31, %32 : vector<8x128xf32>
    %c0_20 = arith.constant 0 : index
    %c0_21 = arith.constant 0 : index
    %34 = vector.load %arg7[%c0_20, %c0_21] : memref<8x128xf32, #tpu.memory_space<vmem>>, vector<8x128xf32>
    %35 = arith.mulf %33, %34 : vector<8x128xf32>
    %36 = vector.shape_cast %35 : vector<8x128xf32> to vector<1x8x128xf32>
    %cst_22 = arith.constant dense<0.000000e+00> : vector<1xf32>
    %37 = vector.multi_reduction <add>, %36, %cst_22 [1, 2] : vector<1x8x128xf32> to vector<1xf32>
    %38 = vector.shape_cast %37 : vector<1xf32> to vector<1x1x1xf32>
    %39 = vector.extract %38[0, 0, 0] : f32 from vector<1x1x1xf32>
    %40 = vector.broadcast %39 : f32 to vector<1x1xf32>
    %c0_23 = arith.constant 0 : index
    %c0_24 = arith.constant 0 : index
    %41 = vector.load %arg8[%c0_23, %c0_24] : memref<1x1xf32, #tpu.memory_space<vmem>>, vector<1x1xf32>
    %42 = arith.addf %40, %41 : vector<1x1xf32>
    %c0_25 = arith.constant 0 : index
    %c0_26 = arith.constant 0 : index
    %c0_27 = arith.constant 0 : index
    %43 = vector.load %arg9[%c0_25, %c0_26, %c0_27] : memref<1x1x1xf32, #tpu.memory_space<vmem>>, vector<1x1x1xf32>
    %44 = vector.shape_cast %43 : vector<1x1x1xf32> to vector<1x1xf32>
    %45 = vector.shape_cast %42 : vector<1x1xf32> to vector<1x1x1xf32>
    tpu.vector_store %arg9[%c0_25, %c0_26, %c0_27], %45 {strides = array<i32>} : memref<1x1x1xf32, #tpu.memory_space<vmem>>, vector<1x1x1xf32>,
    return
  }
  func.func @transform_0(%arg0: i32) -> (i32, i32, i32) {
    %c0_i32 = arith.constant 0 : i32
    %c0_i32_0 = arith.constant 0 : i32
    %c0_i32_1 = arith.constant 0 : i32
    return %arg0, %c0_i32, %c0_i32_0 : i32, i32, i32
  }
  func.func @transform_1(%arg0: i32) -> (i32, i32, i32) {
    %c0_i32 = arith.constant 0 : i32
    %c0_i32_0 = arith.constant 0 : i32
    %c0_i32_1 = arith.constant 0 : i32
    return %arg0, %c0_i32, %c0_i32_0 : i32, i32, i32
  }
  func.func @transform_2(%arg0: i32) -> (i32, i32) {
    %c0_i32 = arith.constant 0 : i32
    %c0_i32_0 = arith.constant 0 : i32
    %c0_i32_1 = arith.constant 0 : i32
    return %c0_i32, %c0_i32_0 : i32, i32
  }
  func.func @transform_3(%arg0: i32) -> (i32, i32) {
    %c0_i32 = arith.constant 0 : i32
    %c0_i32_0 = arith.constant 0 : i32
    %c0_i32_1 = arith.constant 0 : i32
    return %c0_i32, %c0_i32_0 : i32, i32
  }
  func.func @transform_4(%arg0: i32) -> (i32, i32) {
    %c0_i32 = arith.constant 0 : i32
    %c0_i32_0 = arith.constant 0 : i32
    %c0_i32_1 = arith.constant 0 : i32
    return %c0_i32, %c0_i32_0 : i32, i32
  }
  func.func @transform_5(%arg0: i32) -> (i32, i32) {
    %c0_i32 = arith.constant 0 : i32
    %c0_i32_0 = arith.constant 0 : i32
    %c0_i32_1 = arith.constant 0 : i32
    return %c0_i32, %c0_i32_0 : i32, i32
  }
  func.func @transform_6(%arg0: i32) -> (i32, i32) {
    %c0_i32 = arith.constant 0 : i32
    %c0_i32_0 = arith.constant 0 : i32
    %c0_i32_1 = arith.constant 0 : i32
    return %c0_i32, %c0_i32_0 : i32, i32
  }
  func.func @transform_7(%arg0: i32) -> (i32, i32) {
    %c0_i32 = arith.constant 0 : i32
    %c0_i32_0 = arith.constant 0 : i32
    %c0_i32_1 = arith.constant 0 : i32
    return %c0_i32, %c0_i32_0 : i32, i32
  }
  func.func @transform_8(%arg0: i32) -> (i32, i32, i32) {
    %c0_i32 = arith.constant 0 : i32
    %c0_i32_0 = arith.constant 0 : i32
    %c0_i32_1 = arith.constant 0 : i32
    return %arg0, %c0_i32, %c0_i32_0 : i32, i32, i32
  }
}

</mosaic_0001>

<bundles_post_ra>
// kernel: tpu_custom_call.1
= control target key start
LH: loop header
LB: loop body
LE: loop exit
PB: predicated region body
PF: predicated region fallthrough
CT: control target
= control target key end

     0   :  { %s1359_s0 = inlined_call_operand.hbm [shape: bf16[2,128,128], index: 0, kind: input, shape index: {}]   ;;  %s1360_s1 = inlined_call_operand.vmem [shape: f32[2,16,128], index: 1, kind: input, shape index: {}]   ;;  %s1361_s2 = inlined_call_operand.vmem [shape: f32[32,16], index: 2, kind: input, shape index: {}]   ;;  %s1362_s3 = inlined_call_operand.vmem [shape: f32[32,1], index: 3, kind: input, shape index: {}]   ;;  %s1363_s4 = inlined_call_operand.vmem [shape: f32[8,32], index: 4, kind: input, shape index: {}]   ;;  %s1364_s5 = inlined_call_operand.vmem [shape: f32[8,1], index: 5, kind: input, shape index: {}]   ;;  %s1365_s6 = inlined_call_operand.vmem [shape: f32[8,128], index: 6, kind: input, shape index: {}]   ;;  %s1366_s7 = inlined_call_operand.<no memory space> [shape: f32[1,1], index: 7, kind: input, shape index: {}]   ;;  %s1367_s8 = inlined_call_operand.vmem [shape: f32[2,1,1], index: 8, kind: output, shape index: {}]  }
   0x1   :  { %v13_v0 = vstv %s1366_s7 }
   0x2   :  { %14 = vst [vmem:[#allocation2] sm:$0x1] %v13_v0 }
   0x3   :  { %15 = vsyncpa [#allocation4], 0 }
   0x4   :  { %17 = vsyncpa [#allocation4 + $0x1], 0  ;;  %s1162_s29 = smov 0   ;;  %s1164_s30 = smov 0  }
   0x5   :  { %s1166_s9 = smov 0   ;;  %s1168_s10 = smov 0  }
   0x6 LB: > { %s1181_s7 = sadd.s32 4294967295, %s1105_s10   ;;  %s1184_s11 = sadd.s32 1, %s1105_s10   ;;  %s1105_s10 = sphi %s1168_s10, %s1374_s10   ;;  %s1101_s9 = sphi %s1166_s9, %s1373_s9   ;;  %s1097_s30 = sphi %s1164_s30, %s1372_s30   ;;  %s1093_s29 = sphi %s1162_s29, %s1371_s29  }
   0x7   : > { %s27_s12 = ssub.s32 %s1105_s10, %s1184_s11  ;;  %s30_s13 = sadd.s32 1, %s1101_s9 }
   0x8   : > { %p28_p0 = scmp.eq.s32.totalorder %s27_s12, 0  ;;  %p37_p1 = scmp.ne.s32.totalorder %s1101_s9, %s1097_s30 }
   0x9   : > { %p38_p2 = scmp.eq.s32.totalorder %s1105_s10, 0  ;;  %p43_p3 = scmp.ne.s32.totalorder %s1097_s30, %s1093_s29 }
   0xa   : > { %s1194_s14 = scalar_select %p28_p0, %s1101_s9, %s30_s13  }
   0xb   : > { %p39_p4 = por %p38_p2, %p37_p1  ;;  %p44_p5 = scmp.eq.s32.totalorder %s1181_s7, 0 }
   0xc   : > { %p982_p6 = scmp.lt.s32.totalorder %s1105_s10, 2  ;;  %s263_s16 = sand.u32 1, %s1101_s9  }
   0xd   : > { %p1198_p7 = por %p44_p5, %p43_p3  ;;  %s849_s17 = sshll.u32 %s263_s16, 6 }
   0xe   : > { %s871_s18 = sshll.u32 %s1105_s10, 10  ;;  %s267_s22 = scalar_lea.vmem [#allocation3], %s849_s17 }
   0xf   : > { %s1207_s21 = scalar_lea.hbm %s1359_s0, %s871_s18  ;;  %s274_s23 = sshll.u32 %s267_s22, 4  ;;  %s1209_s23 = int_to_ptr.vmem [resolvable:$true] %s274_s23 }
  0x10   : > { %p1211_p8 = pnand %p982_p6, %p39_p4  ;;  %s1216_s25 = scalar_lea.sflag [#allocation4], %s263_s16 }
  0x11   : > { %s1041_s26 = scalar_lea.hbm %s1207_s21, 1024  ;;  %s1046_s29 = scalar_lea.hbm %s1359_s0, 2048 }
  0x12   : > { %p1042_p10 = scmp.ne.s32.totalorder %s1207_s21, %s1041_s26  ;;  %p1043_p11 = pneg %p1211_p8 }
  0x13   : > { %p1047_p0 = scmp.lt.u32.totalorder %s1207_s21, %s1359_s0  ;;  %p1048_p1 = scmp.lt.u32.totalorder %s1046_s29, %s1041_s26 }
  0x14   : > { %p1044_p12 = pnand %p1043_p11, %p1042_p10  ;;  %p1050_p3 = scmp.lt.u32.totalorder %s1041_s26, %s1207_s21 }
  0x15   : > { %p1049_p2 = por %p1048_p1, %p1047_p0 }
  0x16   : > { %p1045_p13 = pneg %p1044_p12 }
  0x17   : > { %p1051_p4 = por %p1050_p3, %p1049_p2 }
  0x19   : > { %p1052_p5 = pnand %p1051_p4, %p1045_p13 }
  0x1b   : > { %1055 = shalt.err (!%p1052_p5)
}
  0x1c   : > { %s1056_s16 = scalar_lea.vmem %s1209_s23, 1024  ;;  %s1107_s17 = smov [#allocation3]  }
  0x1d   : > { %p1057_p6 = scmp.ne.s32.totalorder %s1209_s23, %s1056_s16  ;;  %s1061_s18 = sshll.u32 %s1107_s17, 4  ;;  %s1062_s18 = int_to_ptr.vmem [resolvable:$false] %s1061_s18 }
  0x1e   : > { %s1063_s19 = scalar_lea.vmem %s1062_s18, 2048  ;;  %p1064_p9 = scmp.lt.s32.totalorder %s1209_s23, %s1062_s18 }
  0x1f   : > { %p1059_p10 = pnand %p1057_p6, %p1043_p11  ;;  %p1065_p0 = scmp.lt.s32.totalorder %s1063_s19, %s1056_s16 }
  0x21   : > { %p1060_p12 = pneg %p1059_p10  ;;  %p1066_p1 = por %p1065_p0, %p1064_p9 }
  0x23   : > { %p1067_p2 = pnand %p1066_p1, %p1060_p12 }
  0x25   : > { %1070 = shalt.err (!%p1067_p2)
}
  0x26   : > { %s1108_s20 = smov 64   ;;  %s1109_s22 = smov 4  }
  0x27   : > { %981 = dma.hbm_to_vmem [thread:$0]  (!%p1211_p8), %s1207_s21, 1024, %s1209_s23, %s1216_s25, %s1108_s20, %s1108_s20, %s1109_s22  }
  0x28   : > { %p290_p11 = scmp.lt.s32.totalorder %s1105_s10, 3  ;;  %p1370_p13 = scmp.ge.s32.totalorder %s1105_s10, 1 }
  0x2a   : > { %p291_p3 = pnand %p1370_p13, %p290_p11 }
  0x2b   : > { %s296_s26 = sand.u32 (!%p291_p3), 1, %s1097_s30  }
  0x2c   : > { %294 = sbr.rel (%p291_p3) target bundleno = 1159 (0x487), region = 52  ;;  %s853_s27 = sshll.u32 (!%p291_p3), %s296_s26, 6 }
  0x2d   : > { %s297_s28 = scalar_lea.sflag (!%p291_p3), [#allocation4], %s296_s26  ;;  %s1248_s29 = scalar_lea.vmem (!%p291_p3), [#allocation3], %s853_s27 }
  0x33   : > { %1088 = dma.done.wait (%p1198_p7), %s297_s28, 1024  }
  0x34   : > { %1090 = vsyncadd (%p1198_p7), %s297_s28, 4294966272  ;;  %p336_p9 = scmp.lt.s32.totalorder %s1181_s7, 1  ;;  %v1110_v1 = vmov 0   ;;  %vm375_vm0 = vcmask 130048   ;;  %v347_v4 = vld [vmem:[%s1361_s2] sm:$0xff]  ;;  %v353_v7 = vld [vmem:[%s1362_s3 + $0x10] sm:$0xff] }
  0x35   : > { %1021 = vset.pattern.permute.xlu0 %v1110_v1  ;;  %1022 = vset.pattern.permute.xlu1 %v1110_v1  ;;  %v351_v6 = vld [vmem:[%s1362_s3] sm:$0xff]  ;;  %v348_v9 = vld [vmem:[%s1361_s2 + $0x8] sm:$0xff]  ;;  %v349_v14 = vld [vmem:[%s1361_s2 + $0x10] sm:$0xff]  ;;  %vm1112_vm1 = vmmov 0   ;;  %vm642_vm2 = vcmask 261120   ;;  %vm773_vm3 = vcmask 0  }
  0x36   : > { %s1376_s7 = smov (!%p336_p9, %s1181_s7), 1  ;;  %907 = vmatprep.mubr.msk.f32.mxu0 %vm375_vm0, %v347_v4  ;;  %357 = vperm.xlu0 %1021, %v351_v6   ;;  %v1273_v8 = vld [vmem:[%s1248_s29] sm:$0xff]   ;;  %v1284_v13 = vld [vmem:[%s1248_s29 + $0x8] sm:$0xff]   ;;  %v354_v15 = vld [vmem:[%s1362_s3 + $0x18] sm:$0xff]  ;;  %v1113_v4 = vmov 0.0  }
  0x37   : > { %s872_s10 = sshll.u32 %s1376_s7, 4  ;;  %v352_v10 = vld [vmem:[%s1362_s3 + $0x8] sm:$0xff]  ;;  %367 = vperm.xlu1 %1022, %v353_v7   ;;  %v489_v11 = vunpack.c.l.bf16 %v1273_v8  ;;  %v490_v12 = vunpack.c.h.bf16 %v1273_v8  ;;  %v491_v16 = vunpack.c.l.bf16 %v1284_v13  ;;  %913 = vmatprep.subr.bf16.mxu1 %v1273_v8  ;;  %v492_v18 = vunpack.c.h.bf16 %v1284_v13  ;;  %v1297_v19 = vld [vmem:[%s1248_s29 + $0x10] sm:$0xff]   ;;  %v636_v21 = vld [vmem:[%s1364_s5] sm:$0xff]  ;;  %s343_s19 = scalar_lea.vmem %s1367_s8, %s1376_s7 }
  0x38   : > { %s340_s24 = scalar_lea.vmem %s1360_s1, %s872_s10  ;;  %v350_v20 = vld [vmem:[%s1361_s2 + $0x18] sm:$0xff]  ;;  %v493_v23 = vunpack.c.l.bf16 %v1297_v19  ;;  %914 = vmatpush3.bf16.msra.mxu1 %v1273_v8  ;;  %v494_v25 = vunpack.c.h.bf16 %v1297_v19  ;;  %v1319_v31 = vld [vmem:[%s1248_s29 + $0x20] sm:$0xff]   ;;  %v483_v36 = vld [vmem:[%s1248_s29 + $0x28] sm:$0xff]  }
  0x39   : > { %v345_v2 = vld [vmem:[%s340_s24] sm:$0xff]  ;;  %v346_v3 = vld [vmem:[%s340_s24 + $0x8] sm:$0xff]  ;;  %v505_v17 = vadd.f32 %v490_v12, %v489_v11  ;;  %915 = vmatprep.subr.bf16.mxu1 %v1284_v13  ;;  %v497_v33 = vunpack.c.l.bf16 %v1319_v31  ;;  %v498_v35 = vunpack.c.h.bf16 %v1319_v31  ;;  %v499_v38 = vunpack.c.l.bf16 %v483_v36  ;;  %v485_v43 = vld [vmem:[%s1248_s29 + $0x30] sm:$0xff]  }
  0x3a   : > { %v964_v5 = vpack.c.bf16 %v346_v3, %v345_v2  ;;  %362 = vperm.xlu0 %1021, %v352_v10   ;;  %v1312_v26 = vld [vmem:[%s1248_s29 + $0x18] sm:$0xff]   ;;  %v500_v40 = vunpack.c.h.bf16 %v483_v36  ;;  %v501_v44 = vunpack.c.l.bf16 %v485_v43  ;;  %v502_v45 = vunpack.c.h.bf16 %v485_v43 }
  0x3b   : > { %372 = vperm.xlu1 %1022, %v354_v15   ;;  %v506_v22 = vadd.f32 %v505_v17, %v491_v16  ;;  %v495_v28 = vunpack.c.l.bf16 %v1312_v26  ;;  %v496_v30 = vunpack.c.h.bf16 %v1312_v26  ;;  %v487_v46 = vld [vmem:[%s1248_s29 + $0x38] sm:$0xff]   ;;  %v1111_v3 = vmov 0.0|0.0  }
  0x3c   : > { %965 = vmatprep.subr.bf16.mxu0 %v964_v5  ;;  %916 = vmatpush3.bf16.msra.mxu1 %v1284_v13  ;;  %v503_v49 = vunpack.c.l.bf16 %v487_v46  ;;  %v504_v50 = vunpack.c.h.bf16 %v487_v46 }
  0x3d   : > { %967 = vmatpush3.bf16.msra.mxu0 %v964_v5  ;;  %v507_v24 = vadd.f32 %v506_v22, %v492_v18  ;;  %917 = vmatprep.subr.bf16.mxu1 %v1297_v19 }
  0x3e   : > { %639 = vperm.xlu0 %1021, %v636_v21   ;;  %944 = vmatprep.subr.bf16.mxu0 %v1113_v4 }
  0x3f   : > { %v508_v27 = vadd.f32 %v507_v24, %v493_v23 }
  0x40   : > { %908 = vmatmul.mubr.msk.f32.vlgmr.msra.gmra.mrb[0].mxu0 %vm375_vm0, %v348_v9  ;;  %918 = vmatpush3.bf16.msra.mxu1 %v1297_v19 }
  0x41   : > { %910 = vmatprep.mubr.msk.f32.mxu0 %vm375_vm0, %v349_v14  ;;  %v509_v29 = vadd.f32 %v508_v27, %v494_v25  ;;  %919 = vmatprep.subr.bf16.mxu1 %v1312_v26 }
  0x42   : > { %945 = vmatpush3.bf16.msra.mxu0 %v1273_v8 }
  0x43   : > { %v510_v32 = vadd.f32 %v509_v29, %v495_v28  ;;  %946 = vmatprep.subr.bf16.mxu0 %v1113_v4 }
  0x44   : > { %911 = vmatmul.mubr.msk.f32.gmra.mrb[2].mxu0 %vm375_vm0, %v350_v20  ;;  %920 = vmatpush3.bf16.msra.mxu1 %v1312_v26 }
  0x45   : > { %v511_v34 = vadd.f32 %v510_v32, %v496_v30  ;;  %921 = vmatprep.subr.bf16.mxu1 %v1319_v31  ;;  %960 = vmatprep.mubr.msk.bf16.mxu0 %vm1112_vm1, %v1113_v4 }
  0x46   : > { %947 = vmatpush3.bf16.msra.mxu0 %v1284_v13 }
  0x47   : > { %v512_v37 = vadd.f32 %v511_v34, %v497_v33  ;;  %948 = vmatprep.subr.bf16.mxu0 %v1113_v4 }
  0x48   : > { %922 = vmatpush3.bf16.msra.mxu1 %v1319_v31 }
  0x49   : > { %v513_v39 = vadd.f32 %v512_v37, %v498_v35  ;;  %923 = vmatprep.subr.bf16.mxu1 %v483_v36 }
  0x4a   : > { %949 = vmatpush3.bf16.msra.mxu0 %v1297_v19 }
  0x4b   : > { %v514_v41 = vadd.f32 %v513_v39, %v499_v38  ;;  %950 = vmatprep.subr.bf16.mxu0 %v1113_v4 }
  0x4c   : > { %924 = vmatpush3.bf16.msra.mxu1 %v483_v36 }
  0x4d   : > { %v515_v42 = vadd.f32 %v514_v41, %v500_v40  ;;  %925 = vmatprep.subr.bf16.mxu1 %v485_v43 }
  0x4e   : > { %951 = vmatpush3.bf16.msra.mxu0 %v1312_v26 }
  0x4f   : > { %v516_v47 = vadd.f32 %v515_v42, %v501_v44  ;;  %952 = vmatprep.subr.bf16.mxu0 %v1113_v4 }
  0x50   : > { %926 = vmatpush3.bf16.msra.mxu1 %v485_v43 }
  0x51   : > { %v517_v48 = vadd.f32 %v516_v47, %v502_v45  ;;  %927 = vmatprep.subr.bf16.mxu1 %v487_v46 }
  0x52   : > { %953 = vmatpush3.bf16.msra.mxu0 %v1319_v31  ;;  %v635_v31 = vld [vmem:[%s1363_s4] sm:$0xff] }
  0x53   : > { %v518_v51 = vadd.f32 %v517_v48, %v503_v49  ;;  %954 = vmatprep.subr.bf16.mxu0 %v1113_v4 }
  0x54   : > { %928 = vmatpush3.bf16.msra.mxu1 %v487_v46 }
  0x55   : > { %v519_v52 = vadd.f32 %v518_v51, %v504_v50  ;;  %968 = vmatprep.subr.bf16.mxu1 %v1111_v3 }
  0x56   : > { %955 = vmatpush3.bf16.msra.mxu0 %v483_v36 }
  0x57   : > { %956 = vmatprep.subr.bf16.mxu0 %v1113_v4  ;;  %v520_v5 = vrot.slane %v519_v52, 4 }
  0x59   : > { %v521_v6 = vadd.f32 %v520_v5, %v519_v52 }
  0x5a   : > { %957 = vmatpush3.bf16.msra.mxu0 %v485_v43  ;;  %v759_v43 = vld [vmem:[%s1365_s6] sm:$0xff] }
  0x5b   : > { %958 = vmatprep.subr.bf16.mxu0 %v1113_v4  ;;  %v522_v7 = vrot.slane %v521_v6, 2 }
  0x5d   : > { %v523_v8 = vadd.f32 %v522_v7, %v521_v6 }
  0x5e   : > { %959 = vmatpush3.bf16.msra.mxu0 %v487_v46 }
  0x5f   : > { %v524_v9 = vrot.slane %v523_v8, 1 }
  0x61   : > { %v525_v10 = vadd.f32 %v524_v9, %v523_v8 }
  0x63   : > { %v526_v11 = vadd.f32 1.0, %v525_v10 }
  0x65   : > { %1039 = vrcp.f32 %v526_v11 }
  0x6f   : > { %v1040_v12 = vpop.eup %1039 }
  0xb5   : > { %v358_v53 = vpop.permute.xlu0 %357 }
  0xb6   : > { %v368_v54 = vpop.permute.xlu1 %367 }
  0xb9   : > { %v363_v55 = vpop.permute.xlu0 %362 }
  0xba   : > { %v373_v60 = vpop.permute.xlu1 %372 }
  0xbd   : > { %v640_v32 = vpop.permute.xlu0 %639 }
 0x113   : > { %v909_v56 = vpop.f32.mrb[0].mxu0 }
 0x114   : > { %v460_v57 = vadd.f32 %v909_v56, %v363_v55  ;;  %v454_v58 = vpop.f32.mrb[1].mxu0 }
 0x115   : > { %v455_v59 = vadd.f32 %v454_v58, %v358_v53  ;;  %v771_v53 = vld [vmem:[#allocation2] sm:$0x1] }
 0x117   : > { %v912_v61 = vpop.f32.mrb[2].mxu0  ;;  %v528_v62 = vpack.c.bf16 %v460_v57, %v455_v59 }
 0x118   : > { %v470_v63 = vadd.f32 %v912_v61, %v373_v60  ;;  %v464_v0 = vpop.f32.mrb[3].mxu0 }
 0x119   : > { %v465_v1 = vadd.f32 %v464_v0, %v368_v54  ;;  %929 = vmatprep.mubr.bf16.mxu1 %v528_v62 }
 0x11b   : > { %v529_v2 = vpack.c.bf16 %v470_v63, %v465_v1 }
 0x11d   : > { %930 = vmatmul.mubr.bf16.vlgmr.msra.gmra.mrb[0].mxu1 %v529_v2 }
 0x11e   : > { %941 = vmatprep.mubr.msk.f32.mxu1 %vm1112_vm1, %v1113_v4 }
 0x1f0   : > { %v931_v13 = vpop.f32.mrb[0].mxu1 }
 0x1f1   : > { %v621_v14 = vadd.f32 %v931_v13, %v465_v1  ;;  %v612_v15 = vpop.f32.mrb[1].mxu1 }
 0x1f2   : > { %v613_v16 = vadd.f32 %v612_v15, %v455_v59  ;;  %v932_v17 = vpop.f32.mrb[2].mxu1 }
 0x1f3   : > { %v629_v18 = vmul.f32 %v1040_v12, %v621_v14  ;;  %v624_v19 = vadd.f32 %v932_v17, %v470_v63  ;;  %v615_v20 = vpop.f32.mrb[3].mxu1 }
 0x1f4   : > { %v627_v21 = vmul.f32 %v1040_v12, %v613_v16  ;;  %v616_v22 = vadd.f32 %v615_v20, %v460_v57 }
 0x1f5   : > { %v630_v23 = vmul.f32 %v1040_v12, %v624_v19  ;;  %v633_v25 = vmax.f32 %v629_v18, 0.0 }
 0x1f6   : > { %v628_v24 = vmul.f32 %v1040_v12, %v616_v22  ;;  %v631_v27 = vmax.f32 %v627_v21, 0.0 }
 0x1f7   : > { %v634_v26 = vmax.f32 %v630_v23, 0.0 }
 0x1f8   : > { %v632_v28 = vmax.f32 %v628_v24, 0.0 }
 0x1f9   : > { %v972_v29 = vpack.c.bf16 %v634_v26, %v633_v25 }
 0x1fa   : > { %v969_v30 = vpack.c.bf16 %v632_v28, %v631_v27 }
 0x1fc   : > { %970 = vmatpush3.bf16.msra.mxu1 %v969_v30 }
 0x1fd   : > { %971 = vmatprep.subr.bf16.mxu1 %v1111_v3 }
 0x200   : > { %973 = vmatpush3.bf16.msra.mxu1 %v972_v29 }
 0x203   : > { %942 = vmatmul.mubr.msk.f32.vlgmr.msra.gmra.mrb[4].mxu1 %vm642_vm2, %v635_v31 }
 0x2d6   : > { %v712_v33 = vpop.f32.mrb[4].mxu1 }
 0x2d7   : > { %v713_v34 = vadd.f32 %v712_v33, %v640_v32  ;;  %v943_v35 = vpop.f32.mrb[5].mxu1 }
 0x2d9   : > { %v716_v36 = vpack.c.bf16 %v713_v34, %v713_v34 }
 0x2db   : > { %961 = vmatmul.mubr.bf16.vlgmr.msra.gmra.mrb[4].mxu0 %v716_v36 }
 0x3ae   : > { %v751_v37 = vpop.f32.mrb[4].mxu0 }
 0x3af   : > { %v752_v38 = vadd.f32 %v751_v37, %v713_v34  ;;  %v962_v39 = vpop.f32.mrb[5].mxu0 }
 0x3b0   : > { %v754_v40 = vpop.f32.mrb[6].mxu0 }
 0x3b1   : > { %v757_v41 = vmul.f32 %v1040_v12, %v752_v38  ;;  %v963_v42 = vpop.f32.mrb[7].mxu0 }
 0x3b3   : > { %v758_v44 = vmax.f32 %v757_v41, 0.0 }
 0x3b5   : > { %v760_v45 = vmul.f32 %v759_v43, %v758_v44 }
 0x3b7   : > { %761 = vadd.xlane.f32.xlu1 %v760_v45 }
 0x444   : > { %v762_v46 = vpop.xlane.xlu1 %761 }
 0x445   : > { %v763_v47 = vrot.slane %v762_v46, 4 }
 0x447   : > { %v764_v48 = vadd.f32 %v763_v47, %v762_v46 }
 0x449   : > { %v765_v49 = vrot.slane %v764_v48, 2 }
 0x44b   : > { %v766_v50 = vadd.f32 %v765_v49, %v764_v48 }
 0x44d   : > { %v767_v51 = vrot.slane %v766_v50, 1 }
 0x44f   : > { %v768_v52 = vadd.f32 %v767_v51, %v766_v50 }
 0x451   : > { %974 = vpush %v768_v52 }
 0x482   : > { %s975_s16 = spop %974 }
 0x483   : > { %v770_v54 = vstv %s975_s16 }
 0x484   : > { %v772_v55 = vadd.f32 %v771_v53, %v770_v54 }
 0x486   : > { %774 = vst.msk [vmem:[%s343_s19] sm:$0x1] %vm773_vm3, %v772_v55 }
 0x487 PF: > { %p20_p7 = scmp.ge.s32.totalorder %s1184_s11, 4   ;;  %s1371_s29 = smov %s1097_s30 }
 0x488   : > { %s1372_s30 = smov %s1101_s9  ;;  %s1373_s9 = smov %s1194_s14 }
 0x489   : > { %s1374_s10 = smov %s1184_s11  ;;  %22 = sbr.rel (!%p20_p7) target bundleno = 6 (0x6), region = 95 }
 0x490   :  { %792 = vsyncpa [#allocation4], 1 }
 0x491   :  { %794 = vsyncpa [#allocation4 + $0x1], 1 }

</bundles_post_ra>
